<compile_context>
chip_gen: v6e
topology: v6e:2x2x1
jax: 0.10.0
libtpu: 0.0.40
codegen_flags: <defaults>
</compile_context>

<pallas_src>
import functools

import jax
import jax.numpy as jnp
from jax.experimental import pallas as pl
from jax.experimental.pallas import tpu as pltpu  # noqa: F401  (kept for TPU-specific tuning hooks)


def gnn_kernel(edge_nodes_ref, edge_attr_ref,
               we_nodes_ref, we_attr_ref, be_ref,
               wg_ref, bg_ref,
               out_ref, *, B, E, inv_E):
    # edge_nodes_ref : [E, 2H]     (batch-invariant gathered node features)
    # edge_attr_ref  : [B*E, De]   (all graphs' edge attributes, flattened)
    # out_ref        : [B, O]

    # 1) Batch-invariant "base" activation, computed exactly once.
    #    edge_nodes @ W_edge[:, :2H]  + b_edge   -> [E, H]
    base = jnp.dot(edge_nodes_ref[...], we_nodes_ref[...],
                   preferred_element_type=jnp.float32) + be_ref[...]

    # 2) Per-graph attr contribution, batched across all B graphs in ONE matmul.
    #    [B*E, De] @ [De, H] -> [B*E, H]
    attr_h = jnp.dot(edge_attr_ref[...], we_attr_ref[...],
                     preferred_element_type=jnp.float32)

    # 3) ReLU + mean-pool per graph (sum * 1/E; reduce runs on the XLU).
    h = jnp.maximum(attr_h.reshape(B, E, -1) + base[None, :, :], 0.0)  # [B, E, H]
    g = jnp.sum(h, axis=1) * inv_E                                     # [B, H]

    # 4) Graph head, batched across B; single lane-dense store of the output.
    out_ref[...] = jnp.dot(g, wg_ref[...],
                           preferred_element_type=jnp.float32) + bg_ref[...]


def gnn_forward(x, edge_index, edge_attrs, params):
    """x: [N, H], edge_index: [2, E] int32, edge_attrs: [B, E, De]."""
    we_nodes, we_attr, be, wg, bg = (
        params["we_nodes"], params["we_attr"], params["be"],
        params["wg"], params["bg"])

    E = edge_index.shape[1]
    B, _, De = edge_attrs.shape
    O = wg.shape[1]

    # Glue (XLA): gather + concat of node features (batch-invariant), and
    # flatten the attrs so the kernel can run one batched matmul over B*E rows.
    edge_start = jnp.take(x, edge_index[0], axis=0)                 # [E, H]
    edge_end = jnp.take(x, edge_index[1], axis=0)                   # [E, H]
    edge_nodes = jnp.concatenate([edge_start, edge_end], axis=1)    # [E, 2H]
    edge_attrs_flat = edge_attrs.reshape(B * E, De)                 # [B*E, De]

    kernel = functools.partial(gnn_kernel, B=B, E=E, inv_E=1.0 / float(E))

    # Single invocation, no grid: the whole problem (a few tens of KiB) is
    # VMEM-resident; default whole-array BlockSpecs DMA each operand once.
    out = pl.pallas_call(
        kernel,
        out_shape=jax.ShapeDtypeStruct((B, O), jnp.float32),
    )(edge_nodes, edge_attrs_flat, we_nodes, we_attr, be, wg, bg)

    return out


def gnn_reference(x, edge_index, edge_attrs, params):
    """Pure-JAX reference mirroring the PyTorch forward exactly."""
    we_nodes, we_attr, be, wg, bg = (
        params["we_nodes"], params["we_attr"], params["be"],
        params["wg"], params["bg"])
    w_edge = jnp.concatenate([we_nodes, we_attr], axis=0)  # [2H+De, H]
    outs = []
    for edge_attr in edge_attrs:
        edge_start = x[edge_index[0]]
        edge_end = x[edge_index[1]]
        feats = jnp.concatenate([edge_start, edge_end, edge_attr], axis=1)
        h = jax.nn.relu(feats @ w_edge + be)
        g = jnp.mean(h, axis=0, keepdims=True)
        outs.append(g @ wg + bg)
    return jnp.concatenate(outs, axis=0)


if __name__ == "__main__":
    # Small shapes consistent with the module's forward.
    N = 16            # number of nodes
    H = 32            # hidden_dim  (== node feature dim consumed by edge_fc)
    De = 4            # edge_input_dim
    O = 8             # output_dim
    E = 32            # number of edges
    B = 2             # number of edge_attr sets (batch of graphs)

    key = jax.random.PRNGKey(0)
    kx, ke, ka, k1, k2, k3, k4, k5 = jax.random.split(key, 8)

    x = jax.random.normal(kx, (N, H), dtype=jnp.float32)
    edge_index = jax.random.randint(ke, (2, E), 0, N, dtype=jnp.int32)
    edge_attrs = jax.random.normal(ka, (B, E, De), dtype=jnp.float32)

    # Deterministic synthetic parameters.
    # edge_fc: Linear(2H+De, H)  → pre-transposed and column-split:
    #   we_nodes [2H, H], we_attr [De, H], be [1, H]
    # graph_fc: Linear(H, O)     → wg [H, O], bg [1, O]
    scale_e = 1.0 / jnp.sqrt(2.0 * H + De)
    scale_g = 1.0 / jnp.sqrt(float(H))
    params = {
        "we_nodes": scale_e * jax.random.normal(k1, (2 * H, H), dtype=jnp.float32),
        "we_attr": scale_e * jax.random.normal(k2, (De, H), dtype=jnp.float32),
        "be": scale_e * jax.random.normal(k3, (1, H), dtype=jnp.float32),
        "wg": scale_g * jax.random.normal(k4, (H, O), dtype=jnp.float32),
        "bg": scale_g * jax.random.normal(k5, (1, O), dtype=jnp.float32),
    }

    out = gnn_forward(x, edge_index, edge_attrs, params)
    out = jax.block_until_ready(out)

    ref = gnn_reference(x, edge_index, edge_attrs, params)
    assert out.shape == (B, O)
    assert jnp.allclose(out, ref, atol=1e-5, rtol=1e-5), "mismatch vs reference"

    print("KERNEL_OK")
</pallas_src>

<mosaic_0001>
module attributes {stable_mosaic.version = 11 : i64} {
  func.func @gnn_kernel(%arg0: memref<32x64xf32, #tpu.memory_space<vmem>>, %arg1: memref<64x4xf32, #tpu.memory_space<vmem>>, %arg2: memref<64x32xf32, #tpu.memory_space<vmem>>, %arg3: memref<4x32xf32, #tpu.memory_space<vmem>>, %arg4: memref<1x32xf32, #tpu.memory_space<vmem>>, %arg5: memref<32x8xf32, #tpu.memory_space<vmem>>, %arg6: memref<1x8xf32, #tpu.memory_space<vmem>>, %arg7: memref<2x8xf32, #tpu.memory_space<vmem>>) attributes {dimension_semantics = [], scalar_prefetch = 0 : i64, scratch_operands = 0 : i64, tpu.core_type = #tpu.core_type<tc>} {
    %c0 = arith.constant 0 : index
    %c0_0 = arith.constant 0 : index
    %0 = vector.load %arg0[%c0, %c0_0] : memref<32x64xf32, #tpu.memory_space<vmem>>, vector<32x64xf32>
    %c0_1 = arith.constant 0 : index
    %c0_2 = arith.constant 0 : index
    %1 = vector.load %arg2[%c0_1, %c0_2] : memref<64x32xf32, #tpu.memory_space<vmem>>, vector<64x32xf32>
    %cst = arith.constant dense<0.000000e+00> : vector<32x32xf32>
    %2 = tpu.matmul %0, %1, %cst {dimension_numbers = #tpu.dot_dimension_numbers<[1], [0], [0], [1], [0, 0, 1, 1], [], []>} : vector<32x64xf32>, vector<64x32xf32>, vector<32x32xf32> -> vector<32x32xf32>
    %c0_3 = arith.constant 0 : index
    %c0_4 = arith.constant 0 : index
    %3 = vector.load %arg4[%c0_3, %c0_4] : memref<1x32xf32, #tpu.memory_space<vmem>>, vector<1x32xf32>
    %4 = vector.broadcast %3 : vector<1x32xf32> to vector<32x32xf32>
    %5 = arith.addf %2, %4 : vector<32x32xf32>
    %c0_5 = arith.constant 0 : index
    %c0_6 = arith.constant 0 : index
    %6 = vector.load %arg1[%c0_5, %c0_6] : memref<64x4xf32, #tpu.memory_space<vmem>>, vector<64x4xf32>
    %c0_7 = arith.constant 0 : index
    %c0_8 = arith.constant 0 : index
    %7 = vector.load %arg3[%c0_7, %c0_8] : memref<4x32xf32, #tpu.memory_space<vmem>>, vector<4x32xf32>
    %cst_9 = arith.constant dense<0.000000e+00> : vector<64x32xf32>
    %8 = tpu.matmul %6, %7, %cst_9 {dimension_numbers = #tpu.dot_dimension_numbers<[1], [0], [0], [1], [0, 0, 1, 1], [], []>} : vector<64x4xf32>, vector<4x32xf32>, vector<64x32xf32> -> vector<64x32xf32>
    %9 = vector.shape_cast %8 : vector<64x32xf32> to vector<2x32x32xf32>
    %10 = vector.shape_cast %5 : vector<32x32xf32> to vector<1x32x32xf32>
    %11 = vector.broadcast %10 : vector<1x32x32xf32> to vector<2x32x32xf32>
    %12 = arith.addf %9, %11 : vector<2x32x32xf32>
    %cst_10 = arith.constant 0.000000e+00 : f32
    %13 = vector.broadcast %cst_10 : f32 to vector<2x32x32xf32>
    %14 = arith.maximumf %12, %13 : vector<2x32x32xf32>
    %cst_11 = arith.constant dense<0.000000e+00> : vector<2x32xf32>
    %15 = vector.multi_reduction <add>, %14, %cst_11 [1] : vector<2x32x32xf32> to vector<2x32xf32>
    %cst_12 = arith.constant 3.125000e-02 : f32
    %16 = vector.broadcast %cst_12 : f32 to vector<2x32xf32>
    %17 = arith.mulf %15, %16 : vector<2x32xf32>
    %c0_13 = arith.constant 0 : index
    %c0_14 = arith.constant 0 : index
    %18 = vector.load %arg5[%c0_13, %c0_14] : memref<32x8xf32, #tpu.memory_space<vmem>>, vector<32x8xf32>
    %cst_15 = arith.constant dense<0.000000e+00> : vector<2x8xf32>
    %19 = tpu.matmul %17, %18, %cst_15 {dimension_numbers = #tpu.dot_dimension_numbers<[1], [0], [0], [1], [0, 0, 1, 1], [], []>} : vector<2x32xf32>, vector<32x8xf32>, vector<2x8xf32> -> vector<2x8xf32>
    %c0_16 = arith.constant 0 : index
    %c0_17 = arith.constant 0 : index
    %20 = vector.load %arg6[%c0_16, %c0_17] : memref<1x8xf32, #tpu.memory_space<vmem>>, vector<1x8xf32>
    %21 = vector.broadcast %20 : vector<1x8xf32> to vector<2x8xf32>
    %22 = arith.addf %19, %21 : vector<2x8xf32>
    %c0_18 = arith.constant 0 : index
    %c0_19 = arith.constant 0 : index
    %23 = vector.load %arg7[%c0_18, %c0_19] : memref<2x8xf32, #tpu.memory_space<vmem>>, vector<2x8xf32>
    tpu.vector_store %arg7[%c0_18, %c0_19], %22 {strides = array<i32>} : memref<2x8xf32, #tpu.memory_space<vmem>>, vector<2x8xf32>,
    return
  }
}

</mosaic_0001>

<bundles_post_ra>
// kernel: tpu_custom_call.1
= control target key start
LH: loop header
LB: loop body
LE: loop exit
PB: predicated region body
PF: predicated region fallthrough
CT: control target
= control target key end

     0   :  { %vm178_vm0 = vcmask 1043456   ;;  %vm153_vm1 = vcmask 31744   ;;  %vm46_vm2 = vcmask 523264   ;;  %s697_s0 = inlined_call_operand.vmem [shape: f32[32,64], index: 0, kind: input, shape index: {}]   ;;  %s698_s1 = inlined_call_operand.vmem [shape: f32[64,4], index: 1, kind: input, shape index: {}]   ;;  %s699_s2 = inlined_call_operand.vmem [shape: f32[64,32], index: 2, kind: input, shape index: {}]   ;;  %s700_s3 = inlined_call_operand.vmem [shape: f32[4,32], index: 3, kind: input, shape index: {}]   ;;  %s701_s4 = inlined_call_operand.vmem [shape: f32[1,32], index: 4, kind: input, shape index: {}]   ;;  %s702_s5 = inlined_call_operand.vmem [shape: f32[32,8], index: 5, kind: input, shape index: {}]   ;;  %s703_s6 = inlined_call_operand.vmem [shape: f32[1,8], index: 6, kind: input, shape index: {}]   ;;  %s704_s7 = inlined_call_operand.hbm [shape: f32[2,8], index: 7, kind: output, shape index: {}]  }
   0x1   :  { %v38_v0 = vld [vmem:[%s699_s2 + $0x38] sm:$0xff]  ;;  %v37_v1 = vld [vmem:[%s699_s2 + $0x30] sm:$0xff]  ;;  %v152_v2 = vld [vmem:[%s700_s3] sm:$0xf] }
   0x2   :  { %477 = vmatprep.subr.mxu0 %v38_v0  ;;  %v144_v3 = vld [vmem:[%s698_s1] sm:$0xff]  ;;  %v36_v4 = vld [vmem:[%s699_s2 + $0x28] sm:$0xff]  ;;  %499 = vmatprep.subr.msk.mxu1 %vm178_vm0, %v152_v2  ;;  %v146_v6 = vld [vmem:[%s698_s1 + $0x10] sm:$0xff] }
   0x3   :  { %478 = vmatpush3.msra.mxu0 %v38_v0  ;;  %v145_v5 = vld [vmem:[%s698_s1 + $0x8] sm:$0xff]  ;;  %500 = vmatpush3.msk.msra.mxu1 %vm178_vm0, %v152_v2  ;;  %v35_v7 = vld [vmem:[%s699_s2 + $0x20] sm:$0xff]  ;;  %v34_v9 = vld [vmem:[%s699_s2 + $0x18] sm:$0xff] }
   0x4   :  { %479 = vmatprep.subr.mxu0 %v37_v1  ;;  %501 = vmatprep.mubr.msk.f32.mxu1 %vm153_vm1, %v144_v3  ;;  %v27_v8 = vld [vmem:[%s697_s0] sm:$0xff]  ;;  %v147_v10 = vld [vmem:[%s698_s1 + $0x18] sm:$0xff] }
   0x5   :  { %480 = vmatpush3.msra.mxu0 %v37_v1  ;;  %502 = vmatmul.mubr.msk.f32.vlgmr.msra.gmra.mxu1 %vm153_vm1, %v145_v5  ;;  %v148_v11 = vld [vmem:[%s698_s1 + $0x20] sm:$0xff] }
   0x6   :  { %481 = vmatprep.subr.mxu0 %v36_v4  ;;  %504 = vmatprep.mubr.msk.f32.mxu1 %vm153_vm1, %v146_v6 }
   0x7   :  { %482 = vmatpush3.msra.mxu0 %v36_v4  ;;  %493 = vmatprep.mubr.msk.f32.mxu0 %vm46_vm2, %v27_v8 }
   0x8   :  { %483 = vmatprep.subr.mxu0 %v35_v7 }
   0x9   :  { %12 = vsyncpa [#allocation3], 0  ;;  %484 = vmatpush3.msra.mxu0 %v35_v7  ;;  %v33_v12 = vld [vmem:[%s699_s2 + $0x10] sm:$0xff]  ;;  %505 = vmatmul.mubr.msk.f32.gmra.mxu1 %vm153_vm1, %v147_v10  ;;  %v32_v13 = vld [vmem:[%s699_s2 + $0x8] sm:$0xff]  ;;  %v549_v21 = vmov 0.0   ;;  %vm550_vm3 = vmmov 0  }
   0xa   :  { %485 = vmatprep.subr.mxu0 %v34_v9  ;;  %507 = vmatprep.mubr.msk.f32.mxu1 %vm153_vm1, %v148_v11  ;;  %v149_v14 = vld [vmem:[%s698_s1 + $0x28] sm:$0xff]  ;;  %v150_v15 = vld [vmem:[%s698_s1 + $0x30] sm:$0xff]  ;;  %v31_v16 = vld [vmem:[%s699_s2] sm:$0xff]  ;;  %vm303_vm4 = vcmask 261120   ;;  %vm345_vm5 = vcmask 1041409   ;;  %s551_s25 = smov [#allocation2]  }
   0xb   :  { %486 = vmatpush3.msra.mxu0 %v34_v9  ;;  %v28_v17 = vld [vmem:[%s697_s0 + $0x8] sm:$0xff]  ;;  %v151_v18 = vld [vmem:[%s698_s1 + $0x38] sm:$0xff]  ;;  %v29_v19 = vld [vmem:[%s697_s0 + $0x10] sm:$0xff]  ;;  %513 = vmatprep.subr.mxu1 %v549_v21  ;;  %s427_s26 = sshll.u32 %s551_s25, 4  ;;  %vm419_vm6 = vcmask 58368   ;;  %s428_s26 = int_to_ptr.vmem [resolvable:$true] %s427_s26 }
   0xc   :  { %487 = vmatprep.subr.mxu0 %v33_v12  ;;  %v30_v20 = vld [vmem:[%s697_s0 + $0x18] sm:$0xff]  ;;  %v334_v23 = vld [vmem:[%s702_s5 + $0x10] sm:$0xff]  ;;  %v333_v24 = vld [vmem:[%s702_s5 + $0x8] sm:$0xff]  ;;  %s527_s27 = scalar_lea.vmem %s428_s26, 32  ;;  %p532_p1 = scmp.lt.s32.totalorder %s428_s26, %s428_s26 }
   0xd   :  { %488 = vmatpush3.msra.mxu0 %v33_v12  ;;  %508 = vmatmul.mubr.msk.f32.gmra.mxu1 %vm153_vm1, %v149_v14  ;;  %v335_v22 = vld [vmem:[%s702_s5 + $0x18] sm:$0xff]  ;;  %v332_v25 = vld [vmem:[%s702_s5] sm:$0xff]  ;;  %p528_p0 = scmp.ne.s32.totalorder %s428_s26, %s527_s27  ;;  %p533_p2 = scmp.lt.s32.totalorder %s527_s27, %s527_s27 }
   0xe   :  { %489 = vmatprep.subr.mxu0 %v32_v13  ;;  %510 = vmatprep.mubr.msk.f32.mxu1 %vm153_vm1, %v150_v15  ;;  %v435_v30 = vld [vmem:[%s701_s4] ss:$0 sm:$0xff] }
   0xf   :  { %490 = vmatpush3.msra.mxu0 %v32_v13  ;;  %514 = vmatpush3.msra.mxu1 %v335_v22  ;;  %p534_p3 = por %p533_p2, %p532_p1 }
  0x10   :  { %491 = vmatprep.subr.mxu0 %v31_v16  ;;  %515 = vmatprep.subr.mxu1 %v549_v21 }
  0x11   :  { %492 = vmatpush3.msra.mxu0 %v31_v16  ;;  %511 = vmatmul.mubr.msk.f32.gmra.mxu1 %vm153_vm1, %v151_v18  ;;  %p535_p4 = pnand %p534_p3, %p528_p0 }
  0x12   :  { %494 = vmatmul.mubr.msk.f32.vlgmr.msra.gmra.mxu0 %vm46_vm2, %v28_v17  ;;  %516 = vmatpush3.msra.mxu1 %v334_v23 }
  0x13   :  { %496 = vmatprep.mubr.msk.f32.mxu0 %vm46_vm2, %v29_v19  ;;  %517 = vmatprep.subr.mxu1 %v549_v21 }
  0x14   :  { %518 = vmatpush3.msra.mxu1 %v333_v24  ;;  %521 = vmatprep.mubr.msk.f32.mxu1 %vm550_vm3, %v549_v21  ;;  %v449_v24 = vld [vmem:[%s703_s6] ss:$0 sm:$0xff] }
  0x15   :  { %519 = vmatprep.subr.mxu1 %v549_v21 }
  0x16   :  { %497 = vmatmul.mubr.msk.f32.gmra.mxu0 %vm46_vm2, %v30_v20  ;;  %520 = vmatpush3.msra.mxu1 %v332_v25 }
  0xc5   :  { %v503_v26 = vpop.f32.mrf.mxu1 }
  0xc7   :  { %v248_v27 = vpop.f32.mrf.mxu1 }
  0xc9   :  { %v506_v28 = vpop.f32.mrf.mxu1 }
  0xcb   :  { %v258_v29 = vpop.f32.mrf.mxu1 }
  0xcd   :  { %v509_v31 = vpop.f32.mrf.mxu1 }
  0xcf   :  { %v268_v35 = vpop.f32.mrf.mxu1 }
  0xd1   :  { %v512_v43 = vpop.f32.mrf.mxu1 }
  0xd2   :  { %v495_v32 = vpop.f32.mrf.mxu0 }
  0xd3   :  { %v131_v33 = vadd.f32 %v495_v32, %v435_v30  ;;  %v278_v52 = vpop.f32.mrf.mxu1 }
  0xd4   :  { %v125_v34 = vpop.f32.mrf.mxu0 }
  0xd5   :  { %v126_v36 = vadd.f32 %v435_v30, %v125_v34  ;;  %v288_v37 = vadd.f32 %v503_v26, %v131_v33  ;;  %v292_v38 = vadd.f32 %v509_v31, %v131_v33 }
  0xd6   :  { %v498_v39 = vpop.f32.mrf.mxu0 }
  0xd7   :  { %v287_v40 = vadd.f32 %v248_v27, %v126_v36  ;;  %v291_v41 = vadd.f32 %v268_v35, %v126_v36  ;;  %v141_v42 = vadd.f32 %v498_v39, %v435_v30  ;;  %v296_v47 = vmax.f32 %v288_v37, 0.0 }
  0xd8   :  { %v135_v44 = vpop.f32.mrf.mxu0  ;;  %v300_v48 = vmax.f32 %v292_v38, 0.0 }
  0xd9   :  { %v295_v45 = vmax.f32 %v287_v40, 0.0  ;;  %v299_v46 = vmax.f32 %v291_v41, 0.0  ;;  %v136_v49 = vadd.f32 %v435_v30, %v135_v44  ;;  %v290_v50 = vadd.f32 %v506_v28, %v141_v42 }
  0xda   :  { %v294_v51 = vadd.f32 %v512_v43, %v141_v42  ;;  %v305_v57 = vsel %vm303_vm4, %v296_v47, 0.0  ;;  %v318_v58 = vsel %vm303_vm4, %v300_v48, 0.0 }
  0xdb   :  { %v304_v53 = vsel %vm303_vm4, %v295_v45, 0.0  ;;  %v317_v54 = vsel %vm303_vm4, %v299_v46, 0.0  ;;  %v289_v55 = vadd.f32 %v258_v29, %v136_v49  ;;  %v293_v56 = vadd.f32 %v278_v52, %v136_v49 }
  0xdc   :  { %v298_v59 = vmax.f32 %v290_v50, 0.0  ;;  %v302_v60 = vmax.f32 %v294_v51, 0.0  ;;  %v306_v63 = vadd.f32 %v305_v57, %v304_v53  ;;  %v319_v0 = vadd.f32 %v318_v58, %v317_v54 }
  0xdd   :  { %v297_v61 = vmax.f32 %v289_v55, 0.0  ;;  %v301_v62 = vmax.f32 %v293_v56, 0.0 }
  0xde   :  { %v309_v5 = vsel %vm303_vm4, %v298_v59, 0.0  ;;  %v322_v6 = vsel %vm303_vm4, %v302_v60, 0.0 }
  0xdf   :  { %v307_v1 = vsel %vm303_vm4, %v297_v61, 0.0  ;;  %v320_v2 = vsel %vm303_vm4, %v301_v62, 0.0 }
  0xe0   :  { %v308_v3 = vadd.f32 %v307_v1, %v306_v63  ;;  %v321_v4 = vadd.f32 %v320_v2, %v319_v0 }
  0xe2   :  { %v310_v7 = vadd.f32 %v309_v5, %v308_v3  ;;  %v323_v8 = vadd.f32 %v322_v6, %v321_v4 }
  0xe4   :  { %v311_v9 = vrot.slane %v310_v7, 4  ;;  %v324_v10 = vrot.slane %v323_v8, 4 }
  0xe6   :  { %v312_v11 = vadd.f32 %v311_v9, %v310_v7  ;;  %v325_v12 = vadd.f32 %v324_v10, %v323_v8 }
  0xe8   :  { %v313_v13 = vrot.slane %v312_v11, 2  ;;  %v326_v14 = vrot.slane %v325_v12, 2 }
  0xea   :  { %v314_v15 = vadd.f32 %v313_v13, %v312_v11  ;;  %v327_v16 = vadd.f32 %v326_v14, %v325_v12 }
  0xec   :  { %v315_v17 = vrot.slane %v314_v15, 1  ;;  %v328_v18 = vrot.slane %v327_v16, 1 }
  0xee   :  { %v329_v19 = vadd.f32 %v328_v18, %v327_v16  ;;  %v316_v20 = vadd.f32 %v315_v17, %v314_v15 }
  0xf0   :  { %v331_v21 = vmul.f32 0.03125, %v329_v19  ;;  %v330_v22 = vmul.f32 0.03125, %v316_v20 }
  0xf2   :  { %v346_v23 = vsel %vm345_vm5, %v331_v21, %v330_v22 }
  0xf3   :  { %522 = vmatmul.mubr.msk.f32.vlgmr.msra.gmra.mxu1 %vm303_vm4, %v346_v23 }
 0x1b3   :  { %v415_v25 = vpop.f32.mrf.mxu1 }
 0x1b4   :  { %v416_v26 = vadd.f32 %v449_v24, %v415_v25 }
 0x1b5   :  { %v523_v27 = vpop.f32.mrf.mxu1 }
 0x1b6   :  { %420 = vst.msk [vmem:[#allocation2] sm:$0x3] %vm419_vm6, %v416_v26 }
 0x1b7   :  { %538 = shalt.err (!%p535_p4)
}
 0x1b8   :  { %430 = dma.vmem_to_hbm [thread:$0]  %s428_s26, 32, %s704_s7, [#allocation3]  }
 0x1b9   :  { %547 = dma.done.wait [#allocation3], 32  }
 0x1ba   :  { %548 = vsyncadd [#allocation3], 4294967264 }
 0x1bb   :  { %434 = vsyncpa [#allocation3], 1 }

</bundles_post_ra>
